<compile_context>
chip_gen: v5e
topology: v5e:2x2
jax: 0.10.0
libtpu: 0.0.40
codegen_flags: <defaults>
</compile_context>

<pallas_src>
import functools

import jax
import jax.numpy as jnp
from jax.experimental import pallas as pl
from jax.experimental.pallas import tpu as pltpu

_NEG = -1e30  # finite fill for padded vocab lanes (0 * _NEG == 0; vanishes in logsumexp)


def _round_up(x, m):
    return ((x + m - 1) // m) * m


def _cdiv(a, b):
    return (a + b - 1) // b


def _bigram_kernel(*refs, tm, vp, n_valid, compute_loss, emit_logits):
    """One grid step == one (TM, Vp) slab of rows.

    ref layouts:
      compute_loss & emit_logits : x, y, table3, logits, loss
      compute_loss only          : x, y, table3, loss
      logits only                : x, table3, logits

    x/y     : (TM, 1)  int32 token ids / targets for this row tile
    table3  : (3, Vp, Vp) bf16 hi/lo/lo2 split of the padded f32 table
    logits  : (TM, Vp) f32 output slab
    loss    : (1, 8, 128) f32 per-tile partial sum (aligned -> "parallel" grid)
    """
    if compute_loss and emit_logits:
        x_ref, y_ref, table_ref, logits_ref, loss_ref = refs
    elif compute_loss:
        x_ref, y_ref, table_ref, loss_ref = refs
        logits_ref = None
    else:
        x_ref, table_ref, logits_ref = refs

    x = x_ref[...]                                        # (TM, 1) int32
    lane = jax.lax.broadcasted_iota(jnp.int32, (tm, vp), 1)

    # Embedding gather as a one-hot matmul on the MXU. The one-hot operand is
    # exact in bf16; the f32 table was split into three bf16 terms, so three
    # DEFAULT-precision passes (f32 accumulation) reconstruct the gathered f32
    # rows to ~1 ulp -- 2x fewer MXU passes than precision=HIGHEST.
    onehot = (lane == x).astype(jnp.bfloat16)             # (TM, Vp)
    logits = jnp.dot(onehot, table_ref[0], preferred_element_type=jnp.float32)
    logits = logits + jnp.dot(onehot, table_ref[1],
                              preferred_element_type=jnp.float32)
    logits = logits + jnp.dot(onehot, table_ref[2],
                              preferred_element_type=jnp.float32)

    if emit_logits:
        logits_ref[...] = logits

    if compute_loss:
        y = y_ref[...]                                    # (TM, 1) int32
        # Numerically stable logsumexp over the (padded) vocab lanes.
        m = jnp.max(logits, axis=-1, keepdims=True)
        lse = m + jnp.log(jnp.sum(jnp.exp(logits - m), axis=-1, keepdims=True))
        # Target logit via one-hot select + lane reduce.
        logit_y = jnp.sum(
            jnp.where(lane == y, logits, 0.0), axis=-1, keepdims=True)
        nll = lse - logit_y                               # (TM, 1)

        # Mask rows beyond the true N (row padding from tiling).
        row0 = pl.program_id(0) * tm
        row = jax.lax.broadcasted_iota(jnp.int32, (tm, 1), 0) + row0
        nll = jnp.where(row < n_valid, nll, 0.0)

        tile_sum = jnp.sum(nll, keepdims=True)            # (1, 1) raw sum
        loss_ref[...] = jnp.broadcast_to(tile_sum, (1, 8, 128))


def _split_table_bf16(table_f32):
    """3-term bf16 decomposition (hi + lo + lo2 ~= x to ~2^-24 relative)."""
    hi = table_f32.astype(jnp.bfloat16)
    r1 = table_f32 - hi.astype(jnp.float32)
    lo = r1.astype(jnp.bfloat16)
    r2 = r1 - lo.astype(jnp.float32)
    lo2 = r2.astype(jnp.bfloat16)
    return jnp.stack([hi, lo, lo2], axis=0)               # (3, Vp, Vp) bf16


def bigram_forward(embedding_table, X, y=None, *, tm=1024, return_logits=True):
    """JAX wrapper matching BigramLanguageModel.forward(X, y).

    Returns (logits, loss):
      - y is None                    : logits (B, T, V),   loss None
      - y given, return_logits=True  : logits (B*T, V),    loss scalar (mean CE)
      - y given, return_logits=False : logits None,        loss scalar
        (loss-only fast path: skips the logits HBM writeback entirely)
    """
    B, T = X.shape
    V = embedding_table.shape[1]
    N = B * T

    Vp = _round_up(V, 128)                 # lane-dense vocab
    # Big row tiles amortize per-step overhead; cap so the grid keeps >= 2
    # tiles (when N allows) for v7x dual-TensorCore sharding of "parallel".
    TM = max(8, min(tm, _round_up(_cdiv(N, 2), 8)))
    N_pad = _round_up(N, TM)
    num_tiles = N_pad // TM

    # Padded table: valid block holds the embedding, padded lanes get a very
    # negative finite value so they contribute nothing to the logsumexp
    # (and 0 * _NEG == 0 in the one-hot matmul). Split into 3 bf16 terms.
    table_p = jnp.full((Vp, Vp), _NEG, dtype=jnp.float32)
    table_p = table_p.at[:V, :V].set(embedding_table.astype(jnp.float32))
    table3 = _split_table_bf16(table_p)

    x_flat = jnp.zeros((N_pad, 1), jnp.int32).at[:N, 0].set(
        X.reshape(N).astype(jnp.int32))

    compute_loss = y is not None
    emit_logits = return_logits or not compute_loss
    kernel = functools.partial(
        _bigram_kernel, tm=TM, vp=Vp, n_valid=N,
        compute_loss=compute_loss, emit_logits=emit_logits)

    row_spec = pl.BlockSpec((TM, 1), lambda i: (i, 0))
    table_spec = pl.BlockSpec((3, Vp, Vp), lambda i: (0, 0, 0))  # VMEM-resident
    logits_spec = pl.BlockSpec((TM, Vp), lambda i: (i, 0))
    loss_spec = pl.BlockSpec((1, 8, 128), lambda i: (i, 0, 0))
    cparams = pltpu.CompilerParams(dimension_semantics=("parallel",))

    cost = pl.CostEstimate(
        flops=2 * N_pad * Vp * Vp * 3,
        transcendentals=(N_pad * (Vp + 1)) if compute_loss else 0,
        bytes_accessed=(N_pad * 4 * (2 if compute_loss else 1)   # ids
                        + 3 * Vp * Vp * 2                        # table terms
                        + (N_pad * Vp * 4 if emit_logits else 0)  # logits
                        + (num_tiles * 8 * 128 * 4 if compute_loss else 0)),
    )

    if compute_loss:
        y_flat = jnp.zeros((N_pad, 1), jnp.int32).at[:N, 0].set(
            y.reshape(N).astype(jnp.int32))
        loss_shape = jax.ShapeDtypeStruct((num_tiles, 8, 128), jnp.float32)
        if emit_logits:
            out_shape = (jax.ShapeDtypeStruct((N_pad, Vp), jnp.float32),
                         loss_shape)
            out_specs = (logits_spec, loss_spec)
        else:
            out_shape = loss_shape
            out_specs = loss_spec
        outs = pl.pallas_call(
            kernel,
            out_shape=out_shape,
            grid_spec=pltpu.PrefetchScalarGridSpec(
                num_scalar_prefetch=0,
                grid=(num_tiles,),
                in_specs=[row_spec, row_spec, table_spec],
                out_specs=out_specs,
            ),
            compiler_params=cparams,
            cost_estimate=cost,
        )(x_flat, y_flat, table3)
        if emit_logits:
            logits_p, loss_parts = outs
            # NOTE: this [:N, :V] slice is a relayout copy kept only to honor
            # the torch module's (B*T, V) logits contract; consumers that only
            # need the loss should pass return_logits=False (no logits traffic).
            logits = logits_p[:N, :V]
        else:
            loss_parts = outs
            logits = None
        loss = jnp.sum(loss_parts[:, 0, 0]) / N   # single end normalization
        return logits, loss

    # Inference path: no targets -> skip the cross-entropy entirely.
    logits_p = pl.pallas_call(
        kernel,
        out_shape=jax.ShapeDtypeStruct((N_pad, Vp), jnp.float32),
        grid_spec=pltpu.PrefetchScalarGridSpec(
            num_scalar_prefetch=0,
            grid=(num_tiles,),
            in_specs=[row_spec, table_spec],
            out_specs=logits_spec,
        ),
        compiler_params=cparams,
        cost_estimate=cost,
    )(x_flat, table3)
    logits = logits_p[:N, :V].reshape(B, T, V)
    return logits, None


if __name__ == "__main__":
    # Deterministic synthetic setup (mirrors nn.Embedding(vocab_len, vocab_len)
    # initialized with N(0, 1) weights).
    vocab_len = 65
    key = jax.random.PRNGKey(0)
    k_table, k_rest = jax.random.split(key)
    embedding_table = jax.random.normal(
        k_table, (vocab_len, vocab_len), dtype=jnp.float32)

    def ref_forward(table, X, y):
        logits = table[X.reshape(-1)]                               # (N, V)
        lse = jax.scipy.special.logsumexp(logits, axis=-1)          # (N,)
        pick = jnp.take_along_axis(logits, y.reshape(-1, 1), axis=-1)[:, 0]
        return logits, jnp.mean(lse - pick)

    # Small case (matches the original test) + a multi-tile case exercising
    # row padding / partial-loss reduction / the >=2-tile cap.
    for case_idx, (B, T) in enumerate([(2, 8), (4, 160)]):
        kx, ky = jax.random.split(jax.random.fold_in(k_rest, case_idx))
        X = jax.random.randint(kx, (B, T), 0, vocab_len, dtype=jnp.int32)
        y = jax.random.randint(ky, (B, T), 0, vocab_len, dtype=jnp.int32)

        # --- with targets: logits (B*T, V), scalar loss
        logits, loss = bigram_forward(embedding_table, X, y)
        logits = jax.block_until_ready(logits)
        loss = jax.block_until_ready(loss)

        # --- loss-only fast path: no logits writeback
        logits_none, loss_only = bigram_forward(
            embedding_table, X, y, return_logits=False)
        loss_only = jax.block_until_ready(loss_only)
        assert logits_none is None

        # --- without targets: logits (B, T, V), loss None
        logits_no_y, loss_no_y = bigram_forward(embedding_table, X, y=None)
        logits_no_y = jax.block_until_ready(logits_no_y)
        assert loss_no_y is None

        ref_logits, ref_loss = ref_forward(embedding_table, X, y)
        assert logits.shape == (B * T, vocab_len)
        assert logits_no_y.shape == (B, T, vocab_len)
        assert jnp.allclose(logits, ref_logits, atol=1e-5, rtol=1e-5)
        assert jnp.allclose(
            logits_no_y.reshape(B * T, vocab_len), ref_logits,
            atol=1e-5, rtol=1e-5)
        assert jnp.allclose(loss, ref_loss, atol=1e-4, rtol=1e-4)
        assert jnp.allclose(loss_only, ref_loss, atol=1e-4, rtol=1e-4)

    # TODO(synk): `generate` (autoregressive torch.multinomial sampling loop)
    # is host-side control flow around the forward pass; omitted.
    print("KERNEL_OK")
</pallas_src>

<mosaic_0001>
module attributes {stable_mosaic.version = 11 : i64} {
  func.func @_bigram_kernel(%arg0: i32, %arg1: memref<8x1xi32, #tpu.memory_space<vmem>>, %arg2: memref<8x1xi32, #tpu.memory_space<vmem>>, %arg3: memref<3x128x128xbf16, #tpu.memory_space<vmem>>, %arg4: memref<8x128xf32, #tpu.memory_space<vmem>>, %arg5: memref<1x8x128xf32, #tpu.memory_space<vmem>>) attributes {dimension_semantics = [#tpu.dimension_semantics<parallel>], iteration_bounds = array<i64: 2>, scalar_prefetch = 0 : i64, scratch_operands = 0 : i64, tpu.core_type = #tpu.core_type<tc>, window_params = [{transform_indices = @transform_0, window_bounds = array<i64: 8, 1>}, {transform_indices = @transform_1, window_bounds = array<i64: 8, 1>}, {pipeline_mode = #tpu.pipeline_mode<synchronous>, transform_indices = @transform_2, window_bounds = array<i64: 3, 128, 128>}, {transform_indices = @transform_3, window_bounds = array<i64: 8, 128>}, {transform_indices = @transform_4, window_bounds = array<i64: 1, 8, 128>}]} {
    %c0 = arith.constant 0 : index
    %c0_0 = arith.constant 0 : index
    %0 = vector.load %arg1[%c0, %c0_0] : memref<8x1xi32, #tpu.memory_space<vmem>>, vector<8x1xi32>
    %1 = tpu.iota {dimensions = array<i32: 1>} : vector<8x128xi32>
    %2 = vector.broadcast %0 : vector<8x1xi32> to vector<8x128xi32>
    %3 = arith.cmpi eq, %1, %2 : vector<8x128xi32>
    %4 = arith.extui %3 : vector<8x128xi1> to vector<8x128xi32>
    %5 = arith.sitofp %4 : vector<8x128xi32> to vector<8x128xf32>
    %6 = arith.truncf %5 : vector<8x128xf32> to vector<8x128xbf16>
    %c0_1 = arith.constant 0 : index
    %c0_2 = arith.constant 0 : index
    %c0_3 = arith.constant 0 : index
    %7 = vector.load %arg3[%c0_1, %c0_2, %c0_3] : memref<3x128x128xbf16, #tpu.memory_space<vmem>>, vector<1x128x128xbf16>
    %8 = vector.shape_cast %7 : vector<1x128x128xbf16> to vector<128x128xbf16>
    %cst = arith.constant dense<0.000000e+00> : vector<8x128xf32>
    %9 = tpu.matmul %6, %8, %cst {dimension_numbers = #tpu.dot_dimension_numbers<[1], [0], [0], [1], [0, 0, 1, 1], [], []>} : vector<8x128xbf16>, vector<128x128xbf16>, vector<8x128xf32> -> vector<8x128xf32>
    %c1 = arith.constant 1 : index
    %c0_4 = arith.constant 0 : index
    %c0_5 = arith.constant 0 : index
    %10 = vector.load %arg3[%c1, %c0_4, %c0_5] : memref<3x128x128xbf16, #tpu.memory_space<vmem>>, vector<1x128x128xbf16>
    %11 = vector.shape_cast %10 : vector<1x128x128xbf16> to vector<128x128xbf16>
    %cst_6 = arith.constant dense<0.000000e+00> : vector<8x128xf32>
    %12 = tpu.matmul %6, %11, %cst_6 {dimension_numbers = #tpu.dot_dimension_numbers<[1], [0], [0], [1], [0, 0, 1, 1], [], []>} : vector<8x128xbf16>, vector<128x128xbf16>, vector<8x128xf32> -> vector<8x128xf32>
    %13 = arith.addf %9, %12 : vector<8x128xf32>
    %c2 = arith.constant 2 : index
    %c0_7 = arith.constant 0 : index
    %c0_8 = arith.constant 0 : index
    %14 = vector.load %arg3[%c2, %c0_7, %c0_8] : memref<3x128x128xbf16, #tpu.memory_space<vmem>>, vector<1x128x128xbf16>
    %15 = vector.shape_cast %14 : vector<1x128x128xbf16> to vector<128x128xbf16>
    %cst_9 = arith.constant dense<0.000000e+00> : vector<8x128xf32>
    %16 = tpu.matmul %6, %15, %cst_9 {dimension_numbers = #tpu.dot_dimension_numbers<[1], [0], [0], [1], [0, 0, 1, 1], [], []>} : vector<8x128xbf16>, vector<128x128xbf16>, vector<8x128xf32> -> vector<8x128xf32>
    %17 = arith.addf %13, %16 : vector<8x128xf32>
    %c0_10 = arith.constant 0 : index
    %c0_11 = arith.constant 0 : index
    %18 = vector.load %arg4[%c0_10, %c0_11] : memref<8x128xf32, #tpu.memory_space<vmem>>, vector<8x128xf32>
    tpu.vector_store %arg4[%c0_10, %c0_11], %17 {strides = array<i32>} : memref<8x128xf32, #tpu.memory_space<vmem>>, vector<8x128xf32>,
    %c0_12 = arith.constant 0 : index
    %c0_13 = arith.constant 0 : index
    %19 = vector.load %arg2[%c0_12, %c0_13] : memref<8x1xi32, #tpu.memory_space<vmem>>, vector<8x1xi32>
    %cst_14 = arith.constant dense<0xFF800000> : vector<8xf32>
    %20 = vector.multi_reduction <maximumf>, %17, %cst_14 [1] : vector<8x128xf32> to vector<8xf32>
    %21 = vector.shape_cast %20 : vector<8xf32> to vector<8x1xf32>
    %22 = vector.broadcast %21 : vector<8x1xf32> to vector<8x128xf32>
    %23 = arith.subf %17, %22 : vector<8x128xf32>
    %24 = math.exp %23 : vector<8x128xf32>
    %cst_15 = arith.constant dense<0.000000e+00> : vector<8xf32>
    %25 = vector.multi_reduction <add>, %24, %cst_15 [1] : vector<8x128xf32> to vector<8xf32>
    %26 = vector.shape_cast %25 : vector<8xf32> to vector<8x1xf32>
    %27 = math.log %26 : vector<8x1xf32>
    %28 = arith.addf %21, %27 : vector<8x1xf32>
    %29 = vector.broadcast %19 : vector<8x1xi32> to vector<8x128xi32>
    %30 = arith.cmpi eq, %1, %29 : vector<8x128xi32>
    %cst_16 = arith.constant 0.000000e+00 : f32
    %31 = vector.broadcast %cst_16 : f32 to vector<8x128xf32>
    %32 = arith.select %30, %17, %31 : vector<8x128xi1>, vector<8x128xf32>
    %cst_17 = arith.constant dense<0.000000e+00> : vector<8xf32>
    %33 = vector.multi_reduction <add>, %32, %cst_17 [1] : vector<8x128xf32> to vector<8xf32>
    %34 = vector.shape_cast %33 : vector<8xf32> to vector<8x1xf32>
    %35 = arith.subf %28, %34 : vector<8x1xf32>
    %c8_i32 = arith.constant 8 : i32
    %36 = arith.muli %arg0, %c8_i32 : i32
    %37 = tpu.iota {dimensions = array<i32: 0>} : vector<8x1xi32>
    %38 = vector.broadcast %36 : i32 to vector<8x1xi32>
    %39 = arith.addi %37, %38 : vector<8x1xi32>
    %c16_i32 = arith.constant 16 : i32
    %40 = vector.broadcast %c16_i32 : i32 to vector<8x1xi32>
    %41 = arith.cmpi slt, %39, %40 : vector<8x1xi32>
    %cst_18 = arith.constant 0.000000e+00 : f32
    %42 = vector.broadcast %cst_18 : f32 to vector<8x1xf32>
    %43 = arith.select %41, %35, %42 : vector<8x1xi1>, vector<8x1xf32>
    %44 = vector.shape_cast %43 : vector<8x1xf32> to vector<1x8x1xf32>
    %cst_19 = arith.constant dense<0.000000e+00> : vector<1xf32>
    %45 = vector.multi_reduction <add>, %44, %cst_19 [1, 2] : vector<1x8x1xf32> to vector<1xf32>
    %46 = vector.shape_cast %45 : vector<1xf32> to vector<1x1x1xf32>
    %47 = vector.extract %46[0, 0, 0] : f32 from vector<1x1x1xf32>
    %48 = vector.broadcast %47 : f32 to vector<1x1xf32>
    %49 = vector.shape_cast %48 : vector<1x1xf32> to vector<1x1x1xf32>
    %50 = vector.broadcast %49 : vector<1x1x1xf32> to vector<1x8x128xf32>
    %c0_20 = arith.constant 0 : index
    %c0_21 = arith.constant 0 : index
    %c0_22 = arith.constant 0 : index
    %51 = vector.load %arg5[%c0_20, %c0_21, %c0_22] : memref<1x8x128xf32, #tpu.memory_space<vmem>>, vector<1x8x128xf32>
    tpu.vector_store %arg5[%c0_20, %c0_21, %c0_22], %50 {strides = array<i32>} : memref<1x8x128xf32, #tpu.memory_space<vmem>>, vector<1x8x128xf32>,
    return
  }
  func.func @transform_0(%arg0: i32) -> (i32, i32) {
    %c0_i32 = arith.constant 0 : i32
    %c0_i32_0 = arith.constant 0 : i32
    return %arg0, %c0_i32 : i32, i32
  }
  func.func @transform_1(%arg0: i32) -> (i32, i32) {
    %c0_i32 = arith.constant 0 : i32
    %c0_i32_0 = arith.constant 0 : i32
    return %arg0, %c0_i32 : i32, i32
  }
  func.func @transform_2(%arg0: i32) -> (i32, i32, i32) {
    %c0_i32 = arith.constant 0 : i32
    %c0_i32_0 = arith.constant 0 : i32
    %c0_i32_1 = arith.constant 0 : i32
    %c0_i32_2 = arith.constant 0 : i32
    return %c0_i32, %c0_i32_0, %c0_i32_1 : i32, i32, i32
  }
  func.func @transform_3(%arg0: i32) -> (i32, i32) {
    %c0_i32 = arith.constant 0 : i32
    %c0_i32_0 = arith.constant 0 : i32
    return %arg0, %c0_i32 : i32, i32
  }
  func.func @transform_4(%arg0: i32) -> (i32, i32, i32) {
    %c0_i32 = arith.constant 0 : i32
    %c0_i32_0 = arith.constant 0 : i32
    %c0_i32_1 = arith.constant 0 : i32
    return %arg0, %c0_i32, %c0_i32_0 : i32, i32, i32
  }
}

</mosaic_0001>

<bundles_post_ra>
// kernel: tpu_custom_call.1
= control target key start
LH: loop header
LB: loop body
LE: loop exit
PB: predicated region body
PF: predicated region fallthrough
CT: control target
= control target key end

     0   :  { %10 = vsyncpa [#allocation3], 0  ;;  %s1176_s0 = inlined_call_operand.vmem [shape: s32[16,1], index: 0, kind: input, shape index: {}]   ;;  %s1177_s1 = inlined_call_operand.vmem [shape: s32[16,1], index: 1, kind: input, shape index: {}]   ;;  %s1178_s2 = inlined_call_operand.hbm [shape: bf16[3,128,128], index: 2, kind: input, shape index: {}]   ;;  %s1179_s3 = inlined_call_operand.hbm [shape: f32[16,128], index: 3, kind: output, shape index: {0}]   ;;  %s1180_s4 = inlined_call_operand.hbm [shape: f32[2,8,128], index: 4, kind: output, shape index: {1}]  }
   0x1   :  { %11 = vsyncpa [#allocation4], 0 }
   0x2   :  { %13 = vsyncpa [#allocation4 + $0x1], 0 }
   0x3   :  { %14 = vsyncpa [#allocation7], 0 }
   0x4   :  { %16 = vsyncpa [#allocation7 + $0x1], 0  ;;  %s1044_s15 = smov 0   ;;  %s1046_s16 = smov 0  }
   0x5   :  { %s1048_s17 = smov 0   ;;  %s1050_s18 = smov 0  }
   0x6 LB: > { %s1065_s19 = sadd.s32 4294967295, %s1012_s18   ;;  %s673_s20 = sadd.s32 4294967294, %s1012_s18   ;;  %s1012_s18 = sphi %s1050_s18, %s1186_s18   ;;  %s1008_s17 = sphi %s1048_s17, %s1185_s17   ;;  %s1004_s16 = sphi %s1046_s16, %s1184_s16   ;;  %s1000_s15 = sphi %s1044_s15, %s1183_s15  }
   0x7   : > { %s1069_s21 = sadd.s32 1, %s1012_s18   ;;  %s102_s22 = sadd.s32 1, %s1008_s17 }
   0x8   : > { %s99_s23 = ssub.s32 %s1012_s18, %s1069_s21  ;;  %p112_p0 = scmp.ne.s32.totalorder %s1008_s17, %s1004_s16 }
   0x9   : > { %p100_p1 = scmp.eq.s32.totalorder %s99_s23, 0  ;;  %p113_p2 = scmp.eq.s32.totalorder %s1065_s19, 1 }
   0xa   : > { %p118_p3 = scmp.ne.s32.totalorder %s1004_s16, %s1000_s15  ;;  %p119_p4 = scmp.eq.s32.totalorder %s673_s20, 1 }
   0xb   : > { %s1080_s24 = scalar_select %p100_p1, %s1008_s17, %s102_s22  }
   0xc   : > { %p1082_p5 = por %p113_p2, %p112_p0  ;;  %p1086_p6 = por %p119_p4, %p118_p3 }
   0xd   : > { %p674_p7 = scmp.ge.s32.totalorder %s1012_s18, 1  ;;  %p152_p8 = scmp.lt.s32.totalorder %s1012_s18, 3 }
   0xe   : > { %p838_p9 = scmp.eq.s32.totalorder %s1065_s19, 0  ;;  %s163_s29 = sshll.u32 %s1178_s2, 4  ;;  %s164_s29 = int_to_ptr.hbm [resolvable:$true] %s163_s29 }
   0xf   : > { %p153_p10 = pnand %p674_p7, %p152_p8  ;;  %s1014_s30 = smov [#allocation2]  }
  0x10   : > { %s165_s5 = sshll.u32 %s1014_s30, 4  ;;  %s1015_s6 = smov 64   ;;  %s166_s5 = int_to_ptr.vmem [resolvable:$true] %s165_s5 }
  0x11   : > { %p827_p11 = pneg %p153_p10  ;;  %s1016_s7 = smov 4  }
  0x12   : > { %195 = sbr.rel (%p153_p10) target bundleno = 723 (0x2d3), region = 32 }
  0x13   : > { %p828_p12 = pnand %p838_p9, %p827_p11 }
  0x15   : > { %830 = dma.hbm_to_vmem [thread:$0]  (!%p828_p12), %s164_s29, 3072, %s166_s5, [#allocation3], %s1015_s6, %s1015_s6, %s1016_s7  }
  0x17   : > { %987 = dma.done.wait (%p838_p9), [#allocation3], 3072  }
  0x18   : > { %989 = vsyncadd (%p838_p9), [#allocation3], 4294964224  ;;  %p230_p13 = scmp.lt.s32.totalorder %s1065_s19, 1  ;;  %v1017_v0 = vmov 0   ;;  %v808_v2 = vld [vmem:[#allocation2 + $0x78] sm:$0xff]  ;;  %v807_v5 = vld [vmem:[#allocation2 + $0x70] sm:$0xff]  ;;  %v239_v27 = vlaneseq }
  0x19   : > { %878 = vset.pattern.permute.xlu0 %v1017_v0  ;;  %879 = vset.pattern.permute.xlu1 %v1017_v0  ;;  %v800_v3 = vld [vmem:[#allocation2 + $0x38] sm:$0xff]  ;;  %v799_v6 = vld [vmem:[#allocation2 + $0x30] sm:$0xff]  ;;  %v806_v8 = vld [vmem:[#allocation2 + $0x68] sm:$0xff]  ;;  %v1018_v30 = vmov 1.0|1.0   ;;  %s1118_s22 = sand.u32 1, %s1004_s16  }
  0x1a   : > { %s1104_s8 = scalar_select %p230_p13, %s1065_s19, 1  ;;  %v816_v4 = vld [vmem:[#allocation2 + $0xb8] sm:$0xff]  ;;  %329 = vmatpush.bf16.msra.mxu0 %v808_v2  ;;  %390 = vmatpush.bf16.msra.mxu1 %v800_v3  ;;  %v815_v7 = vld [vmem:[#allocation2 + $0xb0] sm:$0xff]  ;;  %v798_v9 = vld [vmem:[#allocation2 + $0x28] sm:$0xff]  ;;  %v240_v28 = vand.u32 127, %v239_v27  ;;  %v504_v46 = vshrl.u32 %v239_v27, 7 }
  0x1b   : > { %468 = vmatpush.bf16.msra.mxu2 %v816_v4  ;;  %v814_v10 = vld [vmem:[#allocation2 + $0xa8] sm:$0xff]  ;;  %v805_v11 = vld [vmem:[#allocation2 + $0x60] sm:$0xff]  ;;  %v804_v14 = vld [vmem:[#allocation2 + $0x58] sm:$0xff]  ;;  %s679_s23 = sshll.u32 %s1118_s22, 3  ;;  %s1124_s28 = sshll.u32 %s1065_s19, 3  ;;  %vm509_vm4 = vcmask 7168  }
  0x1c   : > { %s681_s9 = sshll.u32 %s1104_s8, 3  ;;  %v797_v12 = vld [vmem:[#allocation2 + $0x20] sm:$0xff]  ;;  %v796_v15 = vld [vmem:[#allocation2 + $0x18] sm:$0xff]  ;;  %v803_v17 = vld [vmem:[#allocation2 + $0x50] sm:$0xff]  ;;  %s222_s27 = scalar_lea.vmem [#allocation5], %s679_s23  ;;  %v505_v47 = vstv %s1124_s28 }
  0x1d   : > { %s233_s12 = scalar_lea.vmem %s1176_s0, %s681_s9  ;;  %v813_v13 = vld [vmem:[#allocation2 + $0xa0] sm:$0xff]  ;;  %v812_v16 = vld [vmem:[#allocation2 + $0x98] sm:$0xff]  ;;  %v795_v18 = vld [vmem:[#allocation2 + $0x10] sm:$0xff]  ;;  %s237_s20 = scalar_lea.vmem %s1177_s1, %s681_s9  ;;  %v506_v49 = vadd.s32 %v505_v47, %v504_v46 }
  0x1e   : > { %v238_v1 = vld [vmem:[%s233_s12] sm:$0xff]  ;;  %330 = vmatpush.bf16.msra.mxu0 %v807_v5  ;;  %391 = vmatpush.bf16.msra.mxu1 %v799_v6  ;;  %v811_v19 = vld [vmem:[#allocation2 + $0x90] sm:$0xff]  ;;  %v802_v20 = vld [vmem:[#allocation2 + $0x48] sm:$0xff]  ;;  %s538_s30 = scalar_lea.hbm %s1179_s3, %s1124_s28  ;;  %s540_s5 = sshll.u32 %s222_s27, 4  ;;  %s541_s5 = int_to_ptr.vmem [resolvable:$true] %s540_s5 }
  0x1f   : > { %242 = vperm.xlu0 %878, %v238_v1   ;;  %469 = vmatpush.bf16.msra.mxu2 %v815_v7  ;;  %v794_v21 = vld [vmem:[#allocation2 + $0x8] sm:$0xff]  ;;  %v801_v23 = vld [vmem:[#allocation2 + $0x40] sm:$0xff]  ;;  %vm507_vm3 = vcmp.lt.s32.totalorder %v506_v49, 16  ;;  %s542_s6 = sshll.u32 %s538_s30, 4  ;;  %s523_s7 = scalar_lea.sflag [#allocation4], %s1118_s22  ;;  %s543_s6 = int_to_ptr.hbm [resolvable:$true] %s542_s6 }
  0x20   : > { %v810_v22 = vld [vmem:[#allocation2 + $0x88] sm:$0xff]  ;;  %v793_v24 = vld [vmem:[#allocation2] sm:$0xff]  ;;  %s928_s8 = sshra.s32 %s543_s6, 4  ;;  %s934_s12 = scalar_lea.hbm %s1179_s3, 16  ;;  %s929_s8 = int_to_ptr.hbm [resolvable:$true] %s928_s8 }
  0x21   : > { %v809_v25 = vld [vmem:[#allocation2 + $0x80] sm:$0xff]  ;;  %s930_s9 = scalar_lea.hbm %s929_s8, 8  ;;  %p935_p3 = scmp.lt.s32.totalorder %s929_s8, %s1179_s3 }
  0x22   : > { %331 = vmatpush.bf16.msra.mxu0 %v806_v8  ;;  %392 = vmatpush.bf16.msra.mxu1 %v798_v9  ;;  %v483_v26 = vld [vmem:[%s237_s20] sm:$0xff]  ;;  %p931_p0 = scmp.ne.s32.totalorder %s929_s8, %s930_s9  ;;  %p936_p4 = scmp.lt.s32.totalorder %s934_s12, %s930_s9 }
  0x23   : > { %470 = vmatpush.bf16.msra.mxu2 %v814_v10  ;;  %495 = vperm.xlu1 %879, %v483_v26  }
  0x24   : > { %p932_p1 = pnand %p931_p0, %p1082_p5  ;;  %p937_p7 = por %p936_p4, %p935_p3 }
  0x26   : > { %332 = vmatpush.bf16.msra.mxu0 %v805_v11  ;;  %393 = vmatpush.bf16.msra.mxu1 %v797_v12  ;;  %p933_p2 = pneg %p932_p1 }
  0x27   : > { %471 = vmatpush.bf16.msra.mxu2 %v813_v13 }
  0x28   : > { %p938_p8 = pnand %p937_p7, %p933_p2 }
  0x2a   : > { %333 = vmatpush.bf16.msra.mxu0 %v804_v14  ;;  %394 = vmatpush.bf16.msra.mxu1 %v796_v15 }
  0x2b   : > { %472 = vmatpush.bf16.msra.mxu2 %v812_v16 }
  0x2e   : > { %334 = vmatpush.bf16.msra.mxu0 %v803_v17  ;;  %395 = vmatpush.bf16.msra.mxu1 %v795_v18 }
  0x2f   : > { %473 = vmatpush.bf16.msra.mxu2 %v811_v19 }
  0x32   : > { %335 = vmatpush.bf16.msra.mxu0 %v802_v20  ;;  %396 = vmatpush.bf16.msra.mxu1 %v794_v21 }
  0x33   : > { %474 = vmatpush.bf16.msra.mxu2 %v810_v22 }
  0x36   : > { %336 = vmatpush.bf16.msra.mxu0 %v801_v23  ;;  %397 = vmatpush.bf16.msra.mxu1 %v793_v24 }
  0x37   : > { %475 = vmatpush.bf16.msra.mxu2 %v809_v25 }
  0x91   : > { %v243_v29 = vpop.permute.xlu0 %242 }
  0x92   : > { %vm244_vm0 = vcmp.eq.s32.totalorder %v240_v28, %v243_v29 }
  0x93   : > { %vm716_vm1 = vmpackc.low %vm244_vm0, %vm244_vm0 }
  0x94   : > { %717 = vmatmul.msk.bf16.vlgmr.msra.gmra.mxu0 %vm716_vm1, %v1018_v30  ;;  %751 = vmatmul.msk.bf16.vlgmr.msra.gmra.mxu1 %vm716_vm1, %v1018_v30 }
  0x95   : > { %785 = vmatmul.msk.bf16.vlgmr.msra.gmra.mxu2 %vm716_vm1, %v1018_v30  ;;  %v496_v33 = vpop.permute.xlu1 %495 }
  0x96   : > { %vm497_vm2 = vcmp.eq.s32.totalorder %v240_v28, %v496_v33 }
 0x111   : > { %v338_v31 = vpop.f32.mrf.mxu0  ;;  %v399_v32 = vpop.f32.mrf.mxu1 }
 0x112   : > { %v400_v34 = vadd.f32 %v399_v32, %v338_v31 }
 0x118   : > { %v477_v35 = vpop.f32.mrf.mxu2 }
 0x119   : > { %v481_v36 = vadd.f32 %v477_v35, %v400_v34  ;;  %v340_v37 = vpop.f32.mrf.mxu0  ;;  %v401_v38 = vpop.f32.mrf.mxu1 }
 0x11b   : > { %484 = vmax.xlane.f32.xlu0 %v481_v36  ;;  %v498_v39 = vsel %vm497_vm2, %v481_v36, 0.0  ;;  %482 = vst [vmem:[%s222_s27] sm:$0xff] %v481_v36 }
 0x11c   : > { %499 = vadd.xlane.f32.xlu2 %v498_v39 }
 0x120   : > { %v479_v40 = vpop.f32.mrf.mxu2 }
 0x18e   : > { %v485_v41 = vpop.xlane.xlu0 %484 }
 0x18f   : > { %v486_v42 = vsub.f32 %v481_v36, %v485_v41  ;;  %v500_v52 = vpop.xlane.xlu2 %499 }
 0x191   : > { %v487_v43 = vmul.f32 1.442695, %v486_v42 }
 0x193   : > { %880 = vpow2.f32 %v487_v43 }
 0x199   : > { %v881_v44 = vpop.eup %880 }
 0x19a   : > { %489 = vadd.xlane.f32.xlu1 %v881_v44 }
 0x20d   : > { %v490_v45 = vpop.xlane.xlu1 %489 }
 0x20e   : > { %882 = vlog2.f32 %v490_v45 }
 0x214   : > { %v883_v48 = vpop.eup %882 }
 0x215   : > { %v492_v50 = vmul.f32 0.6931472, %v883_v48 }
 0x217   : > { %v493_v51 = vadd.f32 %v492_v50, %v485_v41 }
 0x219   : > { %v501_v53 = vsub.f32 %v493_v51, %v500_v52 }
 0x21b   : > { %v508_v54 = vsel %vm507_vm3, %v501_v53, 0.0 }
 0x21c   : > { %v510_v55 = vsel %vm509_vm4, %v508_v54, 0.0 }
 0x21d   : > { %511 = vadd.xlane.f32.xlu2 %v510_v55 }
 0x21e   : > { %941 = shalt.err (!%p938_p8)
}
 0x21f   : > { %823 = dma.vmem_to_hbm [thread:$0]  (%p1082_p5), %s541_s5, 128, %s543_s6, %s523_s7  }
 0x220   : > { %s552_s29 = scalar_lea.hbm %s1180_s4, %s1124_s28  ;;  %s229_s19 = scalar_lea.vmem [#allocation6], %s679_s23 }
 0x221   : > { %s554_s30 = sshll.u32 %s229_s19, 4  ;;  %s556_s8 = sshll.u32 %s552_s29, 4  ;;  %s555_s30 = int_to_ptr.vmem [resolvable:$true] %s554_s30  ;;  %s557_s8 = int_to_ptr.hbm [resolvable:$true] %s556_s8 }
 0x222   : > { %s528_s6 = scalar_lea.sflag [#allocation7], %s1118_s22  ;;  %s956_s7 = sshra.s32 %s557_s8, 4  ;;  %s957_s7 = int_to_ptr.hbm [resolvable:$true] %s956_s7 }
 0x223   : > { %s958_s9 = scalar_lea.hbm %s957_s7, 8  ;;  %s962_s28 = scalar_lea.hbm %s1180_s4, 16 }
 0x224   : > { %p959_p9 = scmp.ne.s32.totalorder %s957_s7, %s958_s9  ;;  %p963_p12 = scmp.lt.s32.totalorder %s957_s7, %s1180_s4 }
 0x225   : > { %p964_p13 = scmp.lt.s32.totalorder %s962_s28, %s958_s9 }
 0x226   : > { %p960_p10 = pnand %p959_p9, %p1082_p5 }
 0x227   : > { %p965_p0 = por %p964_p13, %p963_p12 }
 0x228   : > { %p961_p11 = pneg %p960_p10 }
 0x22a   : > { %p966_p1 = pnand %p965_p0, %p961_p11 }
 0x290   : > { %v512_v56 = vpop.xlane.xlu2 %511 }
 0x291   : > { %v513_v57 = vrot.slane %v512_v56, 4 }
 0x293   : > { %v514_v58 = vadd.f32 %v513_v57, %v512_v56 }
 0x295   : > { %v515_v59 = vrot.slane %v514_v58, 2 }
 0x297   : > { %v516_v60 = vadd.f32 %v515_v59, %v514_v58 }
 0x299   : > { %v517_v61 = vrot.slane %v516_v60, 1 }
 0x29b   : > { %v518_v62 = vadd.f32 %v517_v61, %v516_v60 }
 0x29d   : > { %817 = vpush %v518_v62 }
 0x2ce   : > { %s818_s5 = spop %817 }
 0x2cf   : > { %v520_v63 = vstv %s818_s5 }
 0x2d0   : > { %521 = vst [vmem:[%s229_s19] sm:$0xff] %v520_v63 }
 0x2d1   : > { %969 = shalt.err (!%p966_p1)
}
 0x2d2   : > { %824 = dma.vmem_to_hbm [thread:$0]  (%p1082_p5), %s555_s30, 128, %s557_s8, %s528_s6  }
 0x2d3 PF: > { %p840_p2 = scmp.ge.s32.totalorder %s1012_s18, 2  ;;  %s568_s22 = sand.u32 1, %s1000_s15  }
 0x2d4   : > { %s569_s13 = scalar_lea.sflag [#allocation4], %s568_s22 }
 0x2d5   : > { %p832_p3 = pnand %p840_p2, %p1086_p6 }
 0x2d7   : > { %p833_p4 = pneg %p832_p3 }
 0x2d9   : > { %991 = dma.done.wait (%p833_p4), %s569_s13, 128  }
 0x2da   : > { %993 = vsyncadd (%p833_p4), %s569_s13, 4294967168  ;;  %s579_s14 = scalar_lea.sflag [#allocation7], %s568_s22 }
 0x2db   : > { %995 = dma.done.wait (%p833_p4), %s579_s14, 128  }
 0x2dc   : > { %997 = vsyncadd (%p833_p4), %s579_s14, 4294967168  ;;  %p19_p5 = scmp.ge.s32.totalorder %s1069_s21, 4   ;;  %s1183_s15 = smov %s1004_s16 }
 0x2dd   : > { %s1184_s16 = smov %s1008_s17  ;;  %s1185_s17 = smov %s1080_s24 }
 0x2de   : > { %s1186_s18 = smov %s1069_s21  ;;  %21 = sbr.rel (!%p19_p5) target bundleno = 6 (0x6), region = 94 }
 0x2e3   :  { %585 = vsyncpa [#allocation3], 1 }
 0x2e4   :  { %587 = vsyncpa [#allocation3 + $0x1], 1 }
 0x2e5   :  { %588 = vsyncpa [#allocation4], 1 }
 0x2e6   :  { %590 = vsyncpa [#allocation4 + $0x1], 1 }
 0x2e7   :  { %591 = vsyncpa [#allocation7], 1 }
 0x2e8   :  { %593 = vsyncpa [#allocation7 + $0x1], 1 }

</bundles_post_ra>
